<compile_context>
chip_gen: v7x
topology: tpu7x:2x2x1
jax: 0.10.0
libtpu: 0.0.40
codegen_flags: <defaults>
</compile_context>

<pallas_src>
import jax
import jax.numpy as jnp
from jax.experimental import pallas as pl
from jax.experimental.pallas import tpu as pltpu


def _conv_lstm_kernel(w_ref, b_ref, p_ref, c_ref, h_out_ref, c_out_ref):
    # w_ref : (4*Chid, K)    transposed conv weight, K = 9 * Ct_pad
    # b_ref : (4*Chid, 1)    conv bias (broadcast along lanes)
    # p_ref : (1, K, M)      transposed im2col patches, M = H*W
    # c_ref : (1, Chid, M)   current cell state
    # outs  : (1, Chid, M)   h_next, c_next
    chid = c_ref.shape[1]

    # Single large-K MXU matmul: (4*Chid, K) @ (K, M) -> (4*Chid, M), f32 acc.
    gates = jnp.dot(w_ref[...], p_ref[0],
                    preferred_element_type=jnp.float32) + b_ref[...]

    # Gate rows follow the PyTorch channel order [i | f | o | c]; row slices
    # at multiples of 8 are sublane-aligned and stay lane-dense (256 lanes).
    ifo = jax.nn.sigmoid(gates[:3 * chid, :])
    g = jnp.tanh(gates[3 * chid:, :])
    i = ifo[0 * chid:1 * chid]
    f = ifo[1 * chid:2 * chid]
    o = ifo[2 * chid:3 * chid]

    c_next = f * c_ref[0] + i * g
    h_next = o * jnp.tanh(c_next)

    h_out_ref[0] = h_next.astype(h_out_ref.dtype)
    c_out_ref[0] = c_next.astype(c_out_ref.dtype)


def conv_lstm_cell(x, h_cur, c_cur, w, b):
    """Pallas ConvLSTMCell.forward.

    x     : (B, Cin, H, W)              NCHW, like the PyTorch module
    h_cur : (B, Chid, H, W)
    c_cur : (B, Chid, H, W)
    w     : (4*Chid, Cin+Chid, 3, 3)    PyTorch OIHW conv weight
    b     : (4*Chid,)                   conv bias
    returns (h_next, c_next) in NCHW.
    """
    B, Cin, H, W = x.shape
    Chid = h_cur.shape[1]
    Cout = 4 * Chid
    Ct = Cin + Chid
    Ct_p = ((Ct + 7) // 8) * 8          # pad input channels to a multiple of 8
    K = 9 * Ct_p
    M = H * W

    # --- wrapper-side im2col (transposed): rows = (kh, kw, cin), cols = (h, w)
    conv_inp = jnp.concatenate([x, h_cur], axis=1)                    # (B,Ct,H,W)
    conv_inp = jnp.pad(conv_inp,
                       ((0, 0), (0, Ct_p - Ct), (1, 1), (1, 1)))      # (B,Ct_p,H+2,W+2)
    taps = [conv_inp[:, :, kh:kh + H, kw:kw + W]
            for kh in range(3) for kw in range(3)]                    # 9 x (B,Ct_p,H,W)
    patches = jnp.stack(taps, axis=1).reshape(B, K, M)                # (B, K, M)

    # Weight: OIHW -> (O, kh, kw, cin) -> (O, K), cin zero-padded to Ct_p.
    w_p = jnp.pad(w, ((0, 0), (0, Ct_p - Ct), (0, 0), (0, 0)))
    w_t = jnp.transpose(w_p, (0, 2, 3, 1)).reshape(Cout, K)
    b_col = b.reshape(Cout, 1)

    # Cell state in (B, Chid, H*W): free contiguous reshape of NCHW.
    c_flat = c_cur.reshape(B, Chid, M)

    grid_spec = pltpu.PrefetchScalarGridSpec(
        num_scalar_prefetch=0,
        grid=(B,),
        in_specs=[
            pl.BlockSpec((Cout, K), lambda bi: (0, 0)),
            pl.BlockSpec((Cout, 1), lambda bi: (0, 0)),
            pl.BlockSpec((1, K, M), lambda bi: (bi, 0, 0)),
            pl.BlockSpec((1, Chid, M), lambda bi: (bi, 0, 0)),
        ],
        out_specs=[
            pl.BlockSpec((1, Chid, M), lambda bi: (bi, 0, 0)),
            pl.BlockSpec((1, Chid, M), lambda bi: (bi, 0, 0)),
        ],
    )

    h_next, c_next = pl.pallas_call(
        _conv_lstm_kernel,
        out_shape=(
            jax.ShapeDtypeStruct((B, Chid, M), x.dtype),
            jax.ShapeDtypeStruct((B, Chid, M), x.dtype),
        ),
        grid_spec=grid_spec,
        compiler_params=pltpu.CompilerParams(
            dimension_semantics=("parallel",)),
    )(w_t, b_col, patches, c_flat)

    # Free contiguous reshape back to NCHW (no transposes anywhere).
    return h_next.reshape(B, Chid, H, W), c_next.reshape(B, Chid, H, W)


def conv_lstm_cell_ref(x, h_cur, c_cur, w, b):
    """Pure-JAX reference matching the PyTorch forward exactly (NCHW)."""
    conv_inp = jnp.concatenate([x, h_cur], axis=1)
    out = jax.lax.conv_general_dilated(
        conv_inp, w, window_strides=(1, 1), padding="SAME",
        dimension_numbers=("NCHW", "OIHW", "NCHW"))
    out = out + b[None, :, None, None]
    i, f, o, c = jnp.split(out, 4, axis=1)
    i = jax.nn.sigmoid(i)
    f = jax.nn.sigmoid(f)
    o = jax.nn.sigmoid(o)
    c = jnp.tanh(c)
    c_next = f * c_cur + i * c
    h_next = o * jnp.tanh(c_next)
    return h_next, c_next


if __name__ == "__main__":
    # Module hyperparameters (synthetic, deterministic init).
    input_dim = 4
    hidden_dim = 32
    kernel_size = 3
    num_cell = 16          # spatial size; h_0/c_0 are (1, hidden, 16, 16)
    batch = 2
    H = W = num_cell

    key = jax.random.PRNGKey(0)
    k_w, k_b, k_h0, k_c0, k_x = jax.random.split(key, 5)

    Ct = input_dim + hidden_dim
    # Conv2d(Ct -> 4*hidden, k=3, pad=1, bias=True) parameters (deterministic).
    w = 0.1 * jax.random.normal(k_w, (4 * hidden_dim, Ct, kernel_size, kernel_size),
                                dtype=jnp.float32)
    b = 0.1 * jax.random.normal(k_b, (4 * hidden_dim,), dtype=jnp.float32)
    # h_0 / c_0 parameters (zeros in the module; use small randoms so the
    # hidden path is actually exercised), expanded to the batch as in init_hidden.
    h_0 = 0.5 * jax.random.normal(k_h0, (1, hidden_dim, num_cell, num_cell),
                                  dtype=jnp.float32)
    c_0 = 0.5 * jax.random.normal(k_c0, (1, hidden_dim, num_cell, num_cell),
                                  dtype=jnp.float32)
    h_cur = jnp.broadcast_to(h_0, (batch, hidden_dim, H, W))
    c_cur = jnp.broadcast_to(c_0, (batch, hidden_dim, H, W))

    x = jax.random.normal(k_x, (batch, input_dim, H, W), dtype=jnp.float32)

    h_next, c_next = jax.jit(conv_lstm_cell)(x, h_cur, c_cur, w, b)
    h_next = jax.block_until_ready(h_next)
    c_next = jax.block_until_ready(c_next)

    h_ref, c_ref = conv_lstm_cell_ref(x, h_cur, c_cur, w, b)
    assert jnp.allclose(h_next, h_ref, atol=1e-5, rtol=1e-5), "h_next mismatch"
    assert jnp.allclose(c_next, c_ref, atol=1e-5, rtol=1e-5), "c_next mismatch"

    print("KERNEL_OK")
</pallas_src>

<mosaic_0001>
module attributes {stable_mosaic.version = 11 : i64} {
  func.func @_conv_lstm_kernel(%arg0: i32, %arg1: memref<128x360xf32, #tpu.memory_space<vmem>>, %arg2: memref<128x1xf32, #tpu.memory_space<vmem>>, %arg3: memref<1x360x256xf32, #tpu.memory_space<vmem>>, %arg4: memref<1x32x256xf32, #tpu.memory_space<vmem>>, %arg5: memref<1x32x256xf32, #tpu.memory_space<vmem>>, %arg6: memref<1x32x256xf32, #tpu.memory_space<vmem>>) attributes {dimension_semantics = [#tpu.dimension_semantics<parallel>], iteration_bounds = array<i64: 2>, scalar_prefetch = 0 : i64, scratch_operands = 0 : i64, tpu.core_type = #tpu.core_type<tc>, window_params = [{pipeline_mode = #tpu.pipeline_mode<synchronous>, transform_indices = @transform_0, window_bounds = array<i64: 128, 360>}, {pipeline_mode = #tpu.pipeline_mode<synchronous>, transform_indices = @transform_1, window_bounds = array<i64: 128, 1>}, {transform_indices = @transform_2, window_bounds = array<i64: 1, 360, 256>}, {transform_indices = @transform_3, window_bounds = array<i64: 1, 32, 256>}, {transform_indices = @transform_4, window_bounds = array<i64: 1, 32, 256>}, {transform_indices = @transform_5, window_bounds = array<i64: 1, 32, 256>}]} {
    %c0 = arith.constant 0 : index
    %c0_0 = arith.constant 0 : index
    %0 = vector.load %arg1[%c0, %c0_0] : memref<128x360xf32, #tpu.memory_space<vmem>>, vector<128x360xf32>
    %c0_1 = arith.constant 0 : index
    %c0_2 = arith.constant 0 : index
    %c0_3 = arith.constant 0 : index
    %1 = vector.load %arg3[%c0_1, %c0_2, %c0_3] : memref<1x360x256xf32, #tpu.memory_space<vmem>>, vector<1x360x256xf32>
    %2 = vector.shape_cast %1 : vector<1x360x256xf32> to vector<360x256xf32>
    %cst = arith.constant dense<0.000000e+00> : vector<128x256xf32>
    %3 = tpu.matmul %0, %2, %cst {dimension_numbers = #tpu.dot_dimension_numbers<[1], [0], [0], [1], [0, 0, 1, 1], [], []>} : vector<128x360xf32>, vector<360x256xf32>, vector<128x256xf32> -> vector<128x256xf32>
    %c0_4 = arith.constant 0 : index
    %c0_5 = arith.constant 0 : index
    %4 = vector.load %arg2[%c0_4, %c0_5] : memref<128x1xf32, #tpu.memory_space<vmem>>, vector<128x1xf32>
    %5 = vector.broadcast %4 : vector<128x1xf32> to vector<128x256xf32>
    %6 = arith.addf %3, %5 : vector<128x256xf32>
    %7 = vector.extract_strided_slice %6 {offsets = [0, 0], sizes = [96, 256], strides = [1, 1]} : vector<128x256xf32> to vector<96x256xf32>
    %8 = arith.negf %7 : vector<96x256xf32>
    %9 = math.exp %8 : vector<96x256xf32>
    %cst_6 = arith.constant 1.000000e+00 : f32
    %10 = vector.broadcast %cst_6 : f32 to vector<96x256xf32>
    %11 = arith.addf %10, %9 : vector<96x256xf32>
    %12 = arith.divf %10, %11 : vector<96x256xf32>
    %13 = vector.extract_strided_slice %6 {offsets = [96, 0], sizes = [32, 256], strides = [1, 1]} : vector<128x256xf32> to vector<32x256xf32>
    %14 = math.tanh %13 : vector<32x256xf32>
    %15 = vector.extract_strided_slice %12 {offsets = [0, 0], sizes = [32, 256], strides = [1, 1]} : vector<96x256xf32> to vector<32x256xf32>
    %16 = vector.extract_strided_slice %12 {offsets = [32, 0], sizes = [32, 256], strides = [1, 1]} : vector<96x256xf32> to vector<32x256xf32>
    %17 = vector.extract_strided_slice %12 {offsets = [64, 0], sizes = [32, 256], strides = [1, 1]} : vector<96x256xf32> to vector<32x256xf32>
    %c0_7 = arith.constant 0 : index
    %c0_8 = arith.constant 0 : index
    %c0_9 = arith.constant 0 : index
    %18 = vector.load %arg4[%c0_7, %c0_8, %c0_9] : memref<1x32x256xf32, #tpu.memory_space<vmem>>, vector<1x32x256xf32>
    %19 = vector.shape_cast %18 : vector<1x32x256xf32> to vector<32x256xf32>
    %20 = arith.mulf %16, %19 : vector<32x256xf32>
    %21 = arith.mulf %15, %14 : vector<32x256xf32>
    %22 = arith.addf %20, %21 : vector<32x256xf32>
    %23 = math.tanh %22 : vector<32x256xf32>
    %24 = arith.mulf %17, %23 : vector<32x256xf32>
    %c0_10 = arith.constant 0 : index
    %c0_11 = arith.constant 0 : index
    %c0_12 = arith.constant 0 : index
    %25 = vector.load %arg5[%c0_10, %c0_11, %c0_12] : memref<1x32x256xf32, #tpu.memory_space<vmem>>, vector<1x32x256xf32>
    %26 = vector.shape_cast %25 : vector<1x32x256xf32> to vector<32x256xf32>
    %27 = vector.shape_cast %24 : vector<32x256xf32> to vector<1x32x256xf32>
    tpu.vector_store %arg5[%c0_10, %c0_11, %c0_12], %27 {strides = array<i32>} : memref<1x32x256xf32, #tpu.memory_space<vmem>>, vector<1x32x256xf32>,
    %c0_13 = arith.constant 0 : index
    %c0_14 = arith.constant 0 : index
    %c0_15 = arith.constant 0 : index
    %28 = vector.load %arg6[%c0_13, %c0_14, %c0_15] : memref<1x32x256xf32, #tpu.memory_space<vmem>>, vector<1x32x256xf32>
    %29 = vector.shape_cast %28 : vector<1x32x256xf32> to vector<32x256xf32>
    %30 = vector.shape_cast %22 : vector<32x256xf32> to vector<1x32x256xf32>
    tpu.vector_store %arg6[%c0_13, %c0_14, %c0_15], %30 {strides = array<i32>} : memref<1x32x256xf32, #tpu.memory_space<vmem>>, vector<1x32x256xf32>,
    return
  }
  func.func @transform_0(%arg0: i32) -> (i32, i32) {
    %c0_i32 = arith.constant 0 : i32
    %c0_i32_0 = arith.constant 0 : i32
    %c0_i32_1 = arith.constant 0 : i32
    return %c0_i32, %c0_i32_0 : i32, i32
  }
  func.func @transform_1(%arg0: i32) -> (i32, i32) {
    %c0_i32 = arith.constant 0 : i32
    %c0_i32_0 = arith.constant 0 : i32
    %c0_i32_1 = arith.constant 0 : i32
    return %c0_i32, %c0_i32_0 : i32, i32
  }
  func.func @transform_2(%arg0: i32) -> (i32, i32, i32) {
    %c0_i32 = arith.constant 0 : i32
    %c0_i32_0 = arith.constant 0 : i32
    %c0_i32_1 = arith.constant 0 : i32
    return %arg0, %c0_i32, %c0_i32_0 : i32, i32, i32
  }
  func.func @transform_3(%arg0: i32) -> (i32, i32, i32) {
    %c0_i32 = arith.constant 0 : i32
    %c0_i32_0 = arith.constant 0 : i32
    %c0_i32_1 = arith.constant 0 : i32
    return %arg0, %c0_i32, %c0_i32_0 : i32, i32, i32
  }
  func.func @transform_4(%arg0: i32) -> (i32, i32, i32) {
    %c0_i32 = arith.constant 0 : i32
    %c0_i32_0 = arith.constant 0 : i32
    %c0_i32_1 = arith.constant 0 : i32
    return %arg0, %c0_i32, %c0_i32_0 : i32, i32, i32
  }
  func.func @transform_5(%arg0: i32) -> (i32, i32, i32) {
    %c0_i32 = arith.constant 0 : i32
    %c0_i32_0 = arith.constant 0 : i32
    %c0_i32_1 = arith.constant 0 : i32
    return %arg0, %c0_i32, %c0_i32_0 : i32, i32, i32
  }
}

</mosaic_0001>

<bundles_post_ra>
// kernel: conv_lstm_cell.1
= control target key start
LH: loop header
LB: loop body
LE: loop exit
PB: predicated region body
PF: predicated region fallthrough
CT: control target
= control target key end

     0   :  { %s1569_s18 = smov 0   ;;  %s2040_s0 = inlined_call_operand.vmem [shape: f32[128,360], index: 0, kind: input, shape index: {}]   ;;  %s2041_s1 = inlined_call_operand.vmem [shape: f32[128,1], index: 1, kind: input, shape index: {}]   ;;  %s2042_s2 = inlined_call_operand.vmem [shape: f32[2,360,256], index: 2, kind: input, shape index: {}]   ;;  %s2043_s3 = inlined_call_operand.vmem [shape: f32[2,32,256], index: 3, kind: input, shape index: {}]   ;;  %s2044_s4 = inlined_call_operand.vmem [shape: f32[2,32,256], index: 4, kind: output, shape index: {0}]   ;;  %s2045_s5 = inlined_call_operand.vmem [shape: f32[2,32,256], index: 5, kind: output, shape index: {1}]  }
   0x1 LB: > { %s1179_s19 = sadd.s32 4294967295, %s1535_s18   ;;  %p1183_p0 = scmp.ge.s32.totalorder %s1535_s18, 1  ;;  %s1535_s18 = sphi %s1569_s18, %s16_s18  }
   0x2   : > { %p200_p1 = scmp.lt.s32.totalorder %s1535_s18, 3 }
   0x4   : > { %p201_p2 = pnand %p1183_p0, %p200_p1 }
   0x5   : > { %p238_p3 = scmp.lt.s32.totalorder (!%p201_p2), %s1179_s19, 1  ;;  %v259_v0 = vld [vmem:[%s2040_s0 + $0x8] sm:$0xff] (!%p201_p2)  ;;  %v1537_v1 = vmov (!%p201_p2), 0.0   ;;  %v1538_v5 = vmov (!%p201_p2), 0   ;;  %vm492_vm0 = vcmask (!%p201_p2), 850944  }
   0x6   : > { %204 = sbr.rel (%p201_p2) target bundleno = 391 (0x187), region = 36  ;;  %605 = vmatprep.mubr.f32.mxu1 (!%p201_p2), %v259_v0  ;;  %766 = vmatprep.mubr.f32.mxu0 (!%p201_p2), %v1537_v1 }
   0x7   : > { %1399 = vset.pattern.permute.xlu0 (!%p201_p2), %v1538_v5  ;;  %1400 = vset.pattern.permute.xlu1 (!%p201_p2), %v1538_v5 }
   0xd   : > { %s2047_s19 = smov (!%p238_p3, %s1179_s19), 1 }
   0xe   : > { %s1388_s22 = smul.u32 720, %s2047_s19  ;;  %s1978_s13 = sshll.u32 %s2047_s19, 6 }
   0xf   : > { %s1986_s19 = scalar_lea.vmem %s2043_s3, %s1978_s13  ;;  %s2000_s17 = scalar_lea.vmem %s2045_s5, %s1978_s13 }
  0x10   : > { %s1587_s25 = scalar_lea.vmem %s2042_s2, %s1388_s22  ;;  %s2024_s22 = scalar_lea.vmem %s2044_s4, %s1978_s13 }
  0x11   : > { %v307_v2 = vld [vmem:[%s1587_s25 + $0x8] sm:$0xff]  ;;  %v309_v3 = vld [vmem:[%s1587_s25 + $0x18] sm:$0xff]  ;;  %v306_v4 = vld [vmem:[%s1587_s25] sm:$0xff] }
  0x12   : > { %v1236_v6 = vpack.c.bf16 %v309_v3, %v307_v2  ;;  %v308_v7 = vld [vmem:[%s1587_s25 + $0x10] sm:$0xff]  ;;  %v311_v8 = vld [vmem:[%s1587_s25 + $0x28] sm:$0xff]  ;;  %v313_v9 = vld [vmem:[%s1587_s25 + $0x38] sm:$0xff] }
  0x13   : > { %v1238_v10 = vpack.c.bf16 %v308_v7, %v306_v4  ;;  %v1240_v11 = vpack.c.bf16 %v313_v9, %v311_v8  ;;  %v310_v12 = vld [vmem:[%s1587_s25 + $0x20] sm:$0xff]  ;;  %v312_v13 = vld [vmem:[%s1587_s25 + $0x30] sm:$0xff]  ;;  %v315_v14 = vld [vmem:[%s1587_s25 + $0x48] sm:$0xff] }
  0x14   : > { %1237 = vmatprep.subr.bf16.mxu1 %v1236_v6  ;;  %v317_v15 = vld [vmem:[%s1587_s25 + $0x58] sm:$0xff]  ;;  %v1242_v16 = vpack.c.bf16 %v312_v13, %v310_v12  ;;  %v314_v18 = vld [vmem:[%s1587_s25 + $0x40] sm:$0xff]  ;;  %v316_v19 = vld [vmem:[%s1587_s25 + $0x50] sm:$0xff] }
  0x15   : > { %1239 = vmatpush1.bf16.msra.mxu1 %v1238_v10  ;;  %v1244_v17 = vpack.c.bf16 %v317_v15, %v315_v14  ;;  %v319_v20 = vld [vmem:[%s1587_s25 + $0x68] sm:$0xff]  ;;  %v321_v21 = vld [vmem:[%s1587_s25 + $0x78] sm:$0xff]  ;;  %v1246_v22 = vpack.c.bf16 %v316_v19, %v314_v18  ;;  %v318_v24 = vld [vmem:[%s1587_s25 + $0x60] sm:$0xff] }
  0x16   : > { %1241 = vmatprep.subr.bf16.mxu1 %v1240_v11  ;;  %v1248_v23 = vpack.c.bf16 %v321_v21, %v319_v20  ;;  %v320_v25 = vld [vmem:[%s1587_s25 + $0x70] sm:$0xff]  ;;  %v323_v26 = vld [vmem:[%s1587_s25 + $0x88] sm:$0xff]  ;;  %v325_v27 = vld [vmem:[%s1587_s25 + $0x98] sm:$0xff] }
  0x17   : > { %v1250_v28 = vpack.c.bf16 %v320_v25, %v318_v24  ;;  %v322_v29 = vld [vmem:[%s1587_s25 + $0x80] sm:$0xff]  ;;  %v1252_v30 = vpack.c.bf16 %v325_v27, %v323_v26  ;;  %v324_v31 = vld [vmem:[%s1587_s25 + $0x90] sm:$0xff]  ;;  %v371_v32 = vld [vmem:[%s1587_s25 + $0x208] sm:$0xff] }
  0x18   : > { %v373_v33 = vld [vmem:[%s1587_s25 + $0x218] sm:$0xff]  ;;  %v327_v34 = vld [vmem:[%s1587_s25 + $0xa8] sm:$0xff]  ;;  %v370_v37 = vld [vmem:[%s1587_s25 + $0x200] sm:$0xff]  ;;  %v1254_v39 = vpack.c.bf16 %v324_v31, %v322_v29 }
  0x19   : > { %1243 = vmatpush1.bf16.msra.mxu1 %v1242_v16  ;;  %v329_v35 = vld [vmem:[%s1587_s25 + $0xb8] sm:$0xff]  ;;  %v1300_v36 = vpack.c.bf16 %v373_v33, %v371_v32  ;;  %v372_v38 = vld [vmem:[%s1587_s25 + $0x210] sm:$0xff]  ;;  %v326_v40 = vld [vmem:[%s1587_s25 + $0xa0] sm:$0xff] }
  0x1a   : > { %1245 = vmatprep.subr.bf16.mxu1 %v1244_v17  ;;  %v1302_v41 = vpack.c.bf16 %v372_v38, %v370_v37  ;;  %v375_v42 = vld [vmem:[%s1587_s25 + $0x228] sm:$0xff]  ;;  %v377_v43 = vld [vmem:[%s1587_s25 + $0x238] sm:$0xff]  ;;  %v1256_v44 = vpack.c.bf16 %v329_v35, %v327_v34  ;;  %v328_v45 = vld [vmem:[%s1587_s25 + $0xb0] sm:$0xff] }
  0x1b   : > { %1301 = vmatprep.subr.bf16.mxu0 %v1300_v36  ;;  %v1304_v46 = vpack.c.bf16 %v377_v43, %v375_v42  ;;  %v374_v47 = vld [vmem:[%s1587_s25 + $0x220] sm:$0xff]  ;;  %v376_v48 = vld [vmem:[%s1587_s25 + $0x230] sm:$0xff]  ;;  %v331_v49 = vld [vmem:[%s1587_s25 + $0xc8] sm:$0xff]  ;;  %v1258_v54 = vpack.c.bf16 %v328_v45, %v326_v40 }
  0x1c   : > { %v333_v50 = vld [vmem:[%s1587_s25 + $0xd8] sm:$0xff]  ;;  %1303 = vmatpush1.bf16.msra.mxu0 %v1302_v41  ;;  %v1306_v51 = vpack.c.bf16 %v376_v48, %v374_v47  ;;  %v379_v52 = vld [vmem:[%s1587_s25 + $0x248] sm:$0xff]  ;;  %v330_v55 = vld [vmem:[%s1587_s25 + $0xc0] sm:$0xff] }
  0x1d   : > { %1247 = vmatpush1.bf16.msra.mxu1 %v1246_v22  ;;  %1305 = vmatprep.subr.bf16.mxu0 %v1304_v46  ;;  %v381_v53 = vld [vmem:[%s1587_s25 + $0x258] sm:$0xff]  ;;  %v378_v57 = vld [vmem:[%s1587_s25 + $0x240] sm:$0xff]  ;;  %v380_v58 = vld [vmem:[%s1587_s25 + $0x250] sm:$0xff]  ;;  %v1260_v59 = vpack.c.bf16 %v333_v50, %v331_v49 }
  0x1e   : > { %1249 = vmatprep.subr.bf16.mxu1 %v1248_v23  ;;  %v1308_v56 = vpack.c.bf16 %v381_v53, %v379_v52  ;;  %v332_v60 = vld [vmem:[%s1587_s25 + $0xd0] sm:$0xff]  ;;  %v383_v61 = vld [vmem:[%s1587_s25 + $0x268] sm:$0xff]  ;;  %v385_v62 = vld [vmem:[%s1587_s25 + $0x278] sm:$0xff]  ;;  %v1310_v2 = vpack.c.bf16 %v380_v58, %v378_v57 }
  0x1f   : > { %v335_v63 = vld [vmem:[%s1587_s25 + $0xe8] sm:$0xff]  ;;  %v337_v0 = vld [vmem:[%s1587_s25 + $0xf8] sm:$0xff]  ;;  %v1312_v3 = vpack.c.bf16 %v385_v62, %v383_v61  ;;  %v382_v4 = vld [vmem:[%s1587_s25 + $0x260] sm:$0xff]  ;;  %v1262_v6 = vpack.c.bf16 %v332_v60, %v330_v55 }
  0x20   : > { %1307 = vmatpush1.bf16.msra.mxu0 %v1306_v51  ;;  %v384_v5 = vld [vmem:[%s1587_s25 + $0x270] sm:$0xff]  ;;  %v387_v7 = vld [vmem:[%s1587_s25 + $0x288] sm:$0xff]  ;;  %v389_v8 = vld [vmem:[%s1587_s25 + $0x298] sm:$0xff]  ;;  %v1264_v9 = vpack.c.bf16 %v337_v0, %v335_v63 }
  0x21   : > { %1251 = vmatpush1.bf16.msra.mxu1 %v1250_v28  ;;  %1309 = vmatprep.subr.bf16.mxu0 %v1308_v56  ;;  %v334_v10 = vld [vmem:[%s1587_s25 + $0xe0] sm:$0xff]  ;;  %v336_v11 = vld [vmem:[%s1587_s25 + $0xf0] sm:$0xff]  ;;  %v339_v12 = vld [vmem:[%s1587_s25 + $0x108] sm:$0xff]  ;;  %v1314_v14 = vpack.c.bf16 %v384_v5, %v382_v4  ;;  %v1316_v15 = vpack.c.bf16 %v389_v8, %v387_v7 }
  0x22   : > { %1253 = vmatprep.subr.bf16.mxu1 %v1252_v30  ;;  %v341_v13 = vld [vmem:[%s1587_s25 + $0x118] sm:$0xff]  ;;  %v386_v16 = vld [vmem:[%s1587_s25 + $0x280] sm:$0xff]  ;;  %v388_v17 = vld [vmem:[%s1587_s25 + $0x290] sm:$0xff]  ;;  %v1266_v18 = vpack.c.bf16 %v336_v11, %v334_v10 }
  0x23   : > { %v391_v19 = vld [vmem:[%s1587_s25 + $0x2a8] sm:$0xff]  ;;  %v393_v20 = vld [vmem:[%s1587_s25 + $0x2b8] sm:$0xff]  ;;  %v1268_v21 = vpack.c.bf16 %v341_v13, %v339_v12  ;;  %v338_v22 = vld [vmem:[%s1587_s25 + $0x100] sm:$0xff]  ;;  %v1318_v26 = vpack.c.bf16 %v388_v17, %v386_v16 }
  0x24   : > { %1311 = vmatpush1.bf16.msra.mxu0 %v1310_v2  ;;  %v340_v23 = vld [vmem:[%s1587_s25 + $0x110] sm:$0xff]  ;;  %v343_v24 = vld [vmem:[%s1587_s25 + $0x128] sm:$0xff]  ;;  %v345_v25 = vld [vmem:[%s1587_s25 + $0x138] sm:$0xff]  ;;  %v1320_v27 = vpack.c.bf16 %v393_v20, %v391_v19 }
  0x25   : > { %1255 = vmatpush1.bf16.msra.mxu1 %v1254_v39  ;;  %1313 = vmatprep.subr.bf16.mxu0 %v1312_v3  ;;  %v390_v28 = vld [vmem:[%s1587_s25 + $0x2a0] sm:$0xff]  ;;  %v392_v29 = vld [vmem:[%s1587_s25 + $0x2b0] sm:$0xff]  ;;  %v1270_v30 = vpack.c.bf16 %v340_v23, %v338_v22  ;;  %v1272_v31 = vpack.c.bf16 %v345_v25, %v343_v24  ;;  %v347_v34 = vld [vmem:[%s1587_s25 + $0x148] sm:$0xff] }
  0x26   : > { %1257 = vmatprep.subr.bf16.mxu1 %v1256_v44  ;;  %v342_v32 = vld [vmem:[%s1587_s25 + $0x120] sm:$0xff]  ;;  %v344_v33 = vld [vmem:[%s1587_s25 + $0x130] sm:$0xff]  ;;  %v349_v35 = vld [vmem:[%s1587_s25 + $0x158] sm:$0xff]  ;;  %v1322_v36 = vpack.c.bf16 %v392_v29, %v390_v28 }
  0x27   : > { %v1274_v37 = vpack.c.bf16 %v344_v33, %v342_v32  ;;  %v395_v38 = vld [vmem:[%s1587_s25 + $0x2c8] sm:$0xff]  ;;  %v1276_v39 = vpack.c.bf16 %v349_v35, %v347_v34  ;;  %v346_v40 = vld [vmem:[%s1587_s25 + $0x140] sm:$0xff]  ;;  %v348_v41 = vld [vmem:[%s1587_s25 + $0x150] sm:$0xff] }
  0x28   : > { %1315 = vmatpush1.bf16.msra.mxu0 %v1314_v14  ;;  %v351_v42 = vld [vmem:[%s1587_s25 + $0x168] sm:$0xff]  ;;  %v353_v43 = vld [vmem:[%s1587_s25 + $0x178] sm:$0xff]  ;;  %v394_v44 = vld [vmem:[%s1587_s25 + $0x2c0] sm:$0xff]  ;;  %v1278_v47 = vpack.c.bf16 %v348_v41, %v346_v40 }
  0x29   : > { %1259 = vmatpush1.bf16.msra.mxu1 %v1258_v54  ;;  %1317 = vmatprep.subr.bf16.mxu0 %v1316_v15  ;;  %v396_v45 = vld [vmem:[%s2041_s1] sm:$0xff]  ;;  %v398_v46 = vld [vmem:[%s2041_s1 + $0x10] sm:$0xff]  ;;  %v1280_v49 = vpack.c.bf16 %v353_v43, %v351_v42  ;;  %v355_v52 = vld [vmem:[%s1587_s25 + $0x188] sm:$0xff] }
  0x2a   : > { %1261 = vmatprep.subr.bf16.mxu1 %v1260_v59  ;;  %v260_v48 = vld [vmem:[%s2040_s0 + $0x10] sm:$0xff]  ;;  %414 = vperm.xlu0 %1399, %v396_v45   ;;  %v350_v50 = vld [vmem:[%s1587_s25 + $0x160] sm:$0xff]  ;;  %v357_v53 = vld [vmem:[%s1587_s25 + $0x198] sm:$0xff] }
  0x2b   : > { %v352_v51 = vld [vmem:[%s1587_s25 + $0x170] sm:$0xff]  ;;  %424 = vperm.xlu1 %1400, %v398_v46   ;;  %v397_v54 = vld [vmem:[%s2041_s1 + $0x8] sm:$0xff]  ;;  %v399_v55 = vld [vmem:[%s2041_s1 + $0x18] sm:$0xff]  ;;  %v1284_v58 = vpack.c.bf16 %v357_v53, %v355_v52 }
  0x2c   : > { %1319 = vmatpush1.bf16.msra.mxu0 %v1318_v26  ;;  %v1282_v56 = vpack.c.bf16 %v352_v51, %v350_v50  ;;  %v263_v57 = vld [vmem:[%s2040_s0 + $0x28] sm:$0xff]  ;;  %v354_v59 = vld [vmem:[%s1587_s25 + $0x180] sm:$0xff]  ;;  %v356_v60 = vld [vmem:[%s1587_s25 + $0x190] sm:$0xff] }
  0x2d   : > { %1263 = vmatpush1.bf16.msra.mxu1 %v1262_v6  ;;  %1321 = vmatprep.subr.bf16.mxu0 %v1320_v27  ;;  %v359_v61 = vld [vmem:[%s1587_s25 + $0x1a8] sm:$0xff]  ;;  %v361_v62 = vld [vmem:[%s1587_s25 + $0x1b8] sm:$0xff]  ;;  %v400_v63 = vld [vmem:[%s2041_s1 + $0x20] sm:$0xff]  ;;  %v1286_v2 = vpack.c.bf16 %v356_v60, %v354_v59 }
  0x2e   : > { %1265 = vmatprep.subr.bf16.mxu1 %v1264_v9  ;;  %419 = vperm.xlu0 %1399, %v397_v54   ;;  %v401_v0 = vld [vmem:[%s2041_s1 + $0x28] sm:$0xff]  ;;  %v266_v3 = vld [vmem:[%s2040_s0 + $0x40] sm:$0xff]  ;;  %v1288_v4 = vpack.c.bf16 %v361_v62, %v359_v61  ;;  %v360_v6 = vld [vmem:[%s1587_s25 + $0x1b0] sm:$0xff] }
  0x2f   : > { %429 = vperm.xlu1 %1400, %v399_v55   ;;  %v358_v5 = vld [vmem:[%s1587_s25 + $0x1a0] sm:$0xff]  ;;  %v363_v7 = vld [vmem:[%s1587_s25 + $0x1c8] sm:$0xff]  ;;  %v365_v8 = vld [vmem:[%s1587_s25 + $0x1d8] sm:$0xff] }
  0x30   : > { %1323 = vmatpush1.bf16.msra.mxu0 %v1322_v36  ;;  %v402_v9 = vld [vmem:[%s2041_s1 + $0x30] sm:$0xff]  ;;  %v403_v10 = vld [vmem:[%s2041_s1 + $0x38] sm:$0xff]  ;;  %v1290_v11 = vpack.c.bf16 %v360_v6, %v358_v5  ;;  %v1292_v13 = vpack.c.bf16 %v365_v8, %v363_v7  ;;  %v362_v14 = vld [vmem:[%s1587_s25 + $0x1c0] sm:$0xff] }
  0x31   : > { %1267 = vmatpush1.bf16.msra.mxu1 %v1266_v18  ;;  %726 = vmatprep.subr.mxu0 %v395_v38  ;;  %v269_v12 = vld [vmem:[%s2040_s0 + $0x58] sm:$0xff]  ;;  %v364_v15 = vld [vmem:[%s1587_s25 + $0x1d0] sm:$0xff]  ;;  %v367_v16 = vld [vmem:[%s1587_s25 + $0x1e8] sm:$0xff] }
  0x32   : > { %1269 = vmatprep.subr.bf16.mxu1 %v1268_v21  ;;  %434 = vperm.xlu0 %1399, %v400_v63   ;;  %v369_v17 = vld [vmem:[%s1587_s25 + $0x1f8] sm:$0xff]  ;;  %v404_v18 = vld [vmem:[%s2041_s1 + $0x40] sm:$0xff]  ;;  %v405_v19 = vld [vmem:[%s2041_s1 + $0x48] sm:$0xff]  ;;  %v1294_v20 = vpack.c.bf16 %v364_v15, %v362_v14 }
  0x33   : > { %439 = vperm.xlu1 %1400, %v401_v0   ;;  %v272_v21 = vld [vmem:[%s2040_s0 + $0x70] sm:$0xff]  ;;  %v1296_v22 = vpack.c.bf16 %v369_v17, %v367_v16  ;;  %v366_v23 = vld [vmem:[%s1587_s25 + $0x1e0] sm:$0xff]  ;;  %v407_v26 = vld [vmem:[%s2041_s1 + $0x58] sm:$0xff] }
  0x34   : > { %727 = vmatpush1.msra.mxu0 %v394_v44  ;;  %v368_v24 = vld [vmem:[%s1587_s25 + $0x1f0] sm:$0xff]  ;;  %v275_v28 = vld [vmem:[%s2040_s0 + $0x88] sm:$0xff]  ;;  %v408_v29 = vld [vmem:[%s2041_s1 + $0x60] sm:$0xff] }
  0x35   : > { %1271 = vmatpush1.bf16.msra.mxu1 %v1270_v30  ;;  %1191 = vmatmul.mubr.msk.f32.vlgmr.msra.gmra.mrb[0].mxu0 %vm492_vm0, %v260_v48  ;;  %v406_v25 = vld [vmem:[%s2041_s1 + $0x50] sm:$0xff]  ;;  %v1298_v27 = vpack.c.bf16 %v368_v24, %v366_v23  ;;  %v409_v30 = vld [vmem:[%s2041_s1 + $0x68] sm:$0xff]  ;;  %v278_v32 = vld [vmem:[%s2040_s0 + $0xa0] sm:$0xff] }
  0x36   : > { %1273 = vmatprep.subr.bf16.mxu1 %v1272_v31  ;;  %772 = vmatprep.mubr.f32.mxu0 %v1537_v1  ;;  %v258_v31 = vld [vmem:[%s2040_s0] sm:$0xff]  ;;  %v410_v34 = vld [vmem:[%s2041_s1 + $0x70] sm:$0xff]  ;;  %v411_v35 = vld [vmem:[%s2041_s1 + $0x78] sm:$0xff] }
  0x37   : > { %444 = vperm.xlu0 %1399, %v402_v9   ;;  %449 = vperm.xlu1 %1400, %v403_v10   ;;  %v262_v33 = vld [vmem:[%s2040_s0 + $0x20] sm:$0xff]  ;;  %v261_v36 = vld [vmem:[%s2040_s0 + $0x18] sm:$0xff]  ;;  %v284_v40 = vld [vmem:[%s2040_s0 + $0xd0] sm:$0xff] }
  0x38   : > { %v265_v38 = vld [vmem:[%s2040_s0 + $0x38] sm:$0xff]  ;;  %v268_v41 = vld [vmem:[%s2040_s0 + $0x50] sm:$0xff]  ;;  %v267_v42 = vld [vmem:[%s2040_s0 + $0x48] sm:$0xff] }
  0x39   : > { %1275 = vmatpush1.bf16.msra.mxu1 %v1274_v37  ;;  %1192 = vmatmul.mubr.msk.f32.gmra.mrb[2].mxu0 %vm492_vm0, %v263_v57  ;;  %v281_v37 = vld [vmem:[%s2040_s0 + $0xb8] sm:$0xff]  ;;  %v287_v43 = vld [vmem:[%s2040_s0 + $0xe8] sm:$0xff]  ;;  %v270_v45 = vld [vmem:[%s2040_s0 + $0x60] sm:$0xff] }
  0x3a   : > { %1277 = vmatprep.subr.bf16.mxu1 %v1276_v39  ;;  %778 = vmatprep.mubr.f32.mxu0 %v1537_v1  ;;  %v264_v39 = vld [vmem:[%s2040_s0 + $0x30] sm:$0xff]  ;;  %v271_v44 = vld [vmem:[%s2040_s0 + $0x68] sm:$0xff]  ;;  %v290_v46 = vld [vmem:[%s2040_s0 + $0x100] sm:$0xff] }
  0x3b   : > { %454 = vperm.xlu0 %1399, %v404_v18   ;;  %459 = vperm.xlu1 %1400, %v405_v19   ;;  %v273_v48 = vld [vmem:[%s2040_s0 + $0x78] sm:$0xff]  ;;  %v276_v51 = vld [vmem:[%s2040_s0 + $0x90] sm:$0xff]  ;;  %v279_v54 = vld [vmem:[%s2040_s0 + $0xa8] sm:$0xff] }
  0x3c   : > { %v277_v50 = vld [vmem:[%s2040_s0 + $0x98] sm:$0xff]  ;;  %v296_v52 = vld [vmem:[%s2040_s0 + $0x130] sm:$0xff]  ;;  %v299_v55 = vld [vmem:[%s2040_s0 + $0x148] sm:$0xff] }
  0x3d   : > { %1279 = vmatpush1.bf16.msra.mxu1 %v1278_v47  ;;  %1193 = vmatmul.mubr.msk.f32.gmra.mrb[4].mxu0 %vm492_vm0, %v266_v3  ;;  %v274_v47 = vld [vmem:[%s2040_s0 + $0x80] sm:$0xff]  ;;  %v280_v53 = vld [vmem:[%s2040_s0 + $0xb0] sm:$0xff]  ;;  %v285_v60 = vld [vmem:[%s2040_s0 + $0xd8] sm:$0xff] }
  0x3e   : > { %1281 = vmatprep.subr.bf16.mxu1 %v1280_v49  ;;  %784 = vmatprep.mubr.f32.mxu0 %v1537_v1  ;;  %v293_v49 = vld [vmem:[%s2040_s0 + $0x118] sm:$0xff]  ;;  %v282_v57 = vld [vmem:[%s2040_s0 + $0xc0] sm:$0xff]  ;;  %v288_v63 = vld [vmem:[%s2040_s0 + $0xf0] sm:$0xff] }
  0x3f   : > { %464 = vperm.xlu0 %1399, %v406_v25   ;;  %469 = vperm.xlu1 %1400, %v407_v26   ;;  %v286_v59 = vld [vmem:[%s2040_s0 + $0xe0] sm:$0xff]  ;;  %v305_v61 = vld [vmem:[%s2040_s0 + $0x178] sm:$0xff]  ;;  %v291_v0 = vld [vmem:[%s2040_s0 + $0x108] sm:$0xff] }
  0x40   : > { %v289_v62 = vld [vmem:[%s2040_s0 + $0xf8] sm:$0xff]  ;;  %v294_v3 = vld [vmem:[%s2040_s0 + $0x120] sm:$0xff]  ;;  %v300_v7 = vld [vmem:[%s2040_s0 + $0x150] sm:$0xff] }
  0x41   : > { %1283 = vmatpush1.bf16.msra.mxu1 %v1282_v56  ;;  %1194 = vmatmul.mubr.msk.f32.gmra.mrb[6].mxu0 %vm492_vm0, %v269_v12  ;;  %v283_v56 = vld [vmem:[%s2040_s0 + $0xc8] sm:$0xff]  ;;  %v297_v5 = vld [vmem:[%s2040_s0 + $0x138] sm:$0xff]  ;;  %v304_v8 = vld [vmem:[%s2040_s0 + $0x170] sm:$0xff] }
  0x42   : > { %1285 = vmatprep.subr.bf16.mxu1 %v1284_v58  ;;  %790 = vmatprep.mubr.f32.mxu0 %v1537_v1  ;;  %v302_v58 = vld [vmem:[%s2040_s0 + $0x160] sm:$0xff]  ;;  %v301_v6 = vld [vmem:[%s2040_s0 + $0x158] sm:$0xff]  ;;  %v303_v9 = vld [vmem:[%s2040_s0 + $0x168] sm:$0xff] }
  0x43   : > { %474 = vperm.xlu0 %1399, %v408_v29   ;;  %479 = vperm.xlu1 %1400, %v409_v30  }
  0x45   : > { %1287 = vmatpush1.bf16.msra.mxu1 %v1286_v2  ;;  %1195 = vmatmul.mubr.msk.f32.gmra.mrb[8].mxu0 %vm492_vm0, %v272_v21  ;;  %v295_v2 = vld [vmem:[%s2040_s0 + $0x128] sm:$0xff] }
  0x46   : > { %1289 = vmatprep.subr.bf16.mxu1 %v1288_v4  ;;  %796 = vmatprep.mubr.f32.mxu0 %v1537_v1  ;;  %v298_v4 = vld [vmem:[%s2040_s0 + $0x140] sm:$0xff] }
  0x47   : > { %484 = vperm.xlu0 %1399, %v410_v34   ;;  %489 = vperm.xlu1 %1400, %v411_v35  }
  0x49   : > { %1291 = vmatpush1.bf16.msra.mxu1 %v1290_v11  ;;  %1196 = vmatmul.mubr.msk.f32.gmra.mrb[10].mxu0 %vm492_vm0, %v275_v28 }
  0x4a   : > { %1293 = vmatprep.subr.bf16.mxu1 %v1292_v13  ;;  %802 = vmatprep.mubr.f32.mxu0 %v1537_v1 }
  0x4d   : > { %1295 = vmatpush1.bf16.msra.mxu1 %v1294_v20  ;;  %1197 = vmatmul.mubr.msk.f32.gmra.mrb[12].mxu0 %vm492_vm0, %v278_v32 }
  0x4e   : > { %1297 = vmatprep.subr.bf16.mxu1 %v1296_v22  ;;  %808 = vmatprep.mubr.f32.mxu0 %v1537_v1 }
  0x51   : > { %1299 = vmatpush1.bf16.msra.mxu1 %v1298_v27  ;;  %1198 = vmatmul.mubr.msk.f32.gmra.mrb[14].mxu0 %vm492_vm0, %v281_v37 }
  0x52   : > { %814 = vmatprep.mubr.f32.mxu0 %v1537_v1 }
  0x54   : > { %606 = vmatmul.mubr.f32.vlgmr.msra.gmra.mrb[0].mxu1 %v258_v31 }
  0x55   : > { %611 = vmatprep.mubr.f32.mxu1 %v262_v33  ;;  %1199 = vmatmul.mubr.msk.f32.gmra.mrb[16].mxu0 %vm492_vm0, %v284_v40 }
  0x56   : > { %820 = vmatprep.mubr.f32.mxu0 %v1537_v1 }
  0x58   : > { %612 = vmatmul.mubr.f32.gmra.mrb[2].mxu1 %v261_v36 }
  0x59   : > { %617 = vmatprep.mubr.f32.mxu1 %v265_v38  ;;  %1200 = vmatmul.mubr.msk.f32.gmra.mrb[18].mxu0 %vm492_vm0, %v287_v43 }
  0x5a   : > { %826 = vmatprep.mubr.f32.mxu0 %v1537_v1 }
  0x5c   : > { %618 = vmatmul.mubr.f32.gmra.mrb[4].mxu1 %v264_v39 }
  0x5d   : > { %623 = vmatprep.mubr.f32.mxu1 %v268_v41  ;;  %1201 = vmatmul.mubr.msk.f32.gmra.mrb[20].mxu0 %vm492_vm0, %v290_v46 }
  0x5e   : > { %832 = vmatprep.mubr.f32.mxu0 %v1537_v1 }
  0x60   : > { %624 = vmatmul.mubr.f32.gmra.mrb[6].mxu1 %v267_v42 }
  0x61   : > { %629 = vmatprep.mubr.f32.mxu1 %v271_v44  ;;  %1202 = vmatmul.mubr.msk.f32.gmra.mrb[22].mxu0 %vm492_vm0, %v293_v49 }
  0x62   : > { %838 = vmatprep.mubr.f32.mxu0 %v1537_v1 }
  0x64   : > { %630 = vmatmul.mubr.f32.gmra.mrb[8].mxu1 %v270_v45 }
  0x65   : > { %635 = vmatprep.mubr.f32.mxu1 %v274_v47  ;;  %1203 = vmatmul.mubr.msk.f32.gmra.mrb[24].mxu0 %vm492_vm0, %v296_v52 }
  0x66   : > { %844 = vmatprep.mubr.f32.mxu0 %v1537_v1 }
  0x68   : > { %636 = vmatmul.mubr.f32.gmra.mrb[10].mxu1 %v273_v48 }
  0x69   : > { %641 = vmatprep.mubr.f32.mxu1 %v277_v50  ;;  %1204 = vmatmul.mubr.msk.f32.gmra.mrb[26].mxu0 %vm492_vm0, %v299_v55 }
  0x6a   : > { %850 = vmatprep.mubr.f32.mxu0 %v1537_v1 }
  0x6c   : > { %642 = vmatmul.mubr.f32.gmra.mrb[12].mxu1 %v276_v51 }
  0x6d   : > { %647 = vmatprep.mubr.f32.mxu1 %v280_v53  ;;  %1205 = vmatmul.mubr.msk.f32.gmra.mrb[28].mxu0 %vm492_vm0, %v302_v58 }
  0x6e   : > { %856 = vmatprep.mubr.f32.mxu0 %v1537_v1  ;;  %v292_v1 = vld [vmem:[%s2040_s0 + $0x110] sm:$0xff] }
  0x70   : > { %648 = vmatmul.mubr.f32.gmra.mrb[14].mxu1 %v279_v54 }
  0x71   : > { %653 = vmatprep.mubr.f32.mxu1 %v283_v56  ;;  %1206 = vmatmul.mubr.msk.f32.gmra.mrb[30].mxu0 %vm492_vm0, %v305_v61 }
  0x74   : > { %654 = vmatmul.mubr.f32.gmra.mrb[16].mxu1 %v282_v57 }
  0x75   : > { %659 = vmatprep.mubr.f32.mxu1 %v286_v59 }
  0x78   : > { %660 = vmatmul.mubr.f32.gmra.mrb[18].mxu1 %v285_v60 }
  0x79   : > { %665 = vmatprep.mubr.f32.mxu1 %v289_v62 }
  0x7c   : > { %666 = vmatmul.mubr.f32.gmra.mrb[20].mxu1 %v288_v63 }
  0x7d   : > { %671 = vmatprep.mubr.f32.mxu1 %v292_v1 }
  0x80   : > { %672 = vmatmul.mubr.f32.gmra.mrb[22].mxu1 %v291_v0 }
  0x81   : > { %677 = vmatprep.mubr.f32.mxu1 %v295_v2 }
  0x84   : > { %678 = vmatmul.mubr.f32.gmra.mrb[24].mxu1 %v294_v3 }
  0x85   : > { %683 = vmatprep.mubr.f32.mxu1 %v298_v4 }
  0x88   : > { %684 = vmatmul.mubr.f32.gmra.mrb[26].mxu1 %v297_v5 }
  0x89   : > { %689 = vmatprep.mubr.f32.mxu1 %v301_v6 }
  0x8c   : > { %690 = vmatmul.mubr.f32.gmra.mrb[28].mxu1 %v300_v7 }
  0x8d   : > { %695 = vmatprep.mubr.f32.mxu1 %v304_v8 }
  0x90   : > { %696 = vmatmul.mubr.f32.gmra.mrb[30].mxu1 %v303_v9 }
  0xa9   : > { %v415_v20 = vpop.permute.xlu0 %414 }
  0xaa   : > { %v425_v31 = vpop.permute.xlu1 %424 }
  0xad   : > { %v420_v29 = vpop.permute.xlu0 %419 }
  0xae   : > { %v430_v48 = vpop.permute.xlu1 %429 }
  0xb1   : > { %v435_v58 = vpop.permute.xlu0 %434 }
  0xb2   : > { %v440_v7 = vpop.permute.xlu1 %439 }
 0x108   : > { %v768_v10 = vpop.f32.mrb[0].mxu0 }
 0x109   : > { %v770_v11 = vpop.f32.mrb[1].mxu0 }
 0x10c   : > { %v774_v12 = vpop.f32.mrb[2].mxu0 }
 0x10d   : > { %v776_v13 = vpop.f32.mrb[3].mxu0 }
 0x110   : > { %v780_v14 = vpop.f32.mrb[4].mxu0 }
 0x111   : > { %v782_v15 = vpop.f32.mrb[5].mxu0 }
 0x114   : > { %v786_v16 = vpop.f32.mrb[6].mxu0 }
 0x115   : > { %v788_v17 = vpop.f32.mrb[7].mxu0 }
 0x118   : > { %v792_v18 = vpop.f32.mrb[8].mxu0 }
 0x119   : > { %v794_v19 = vpop.f32.mrb[9].mxu0 }
 0x11c   : > { %v1899_v21 = vpop.f32.mrb[10].mxu0 }
 0x11d   : > { %v1901_v22 = vpop.f32.mrb[11].mxu0 }
 0x120   : > { %v1903_v24 = vpop.f32.mrb[12].mxu0 }
 0x121   : > { %v1905_v27 = vpop.f32.mrb[13].mxu0 }
 0x124   : > { %v1907_v34 = vpop.f32.mrb[14].mxu0 }
 0x125   : > { %v1909_v37 = vpop.f32.mrb[15].mxu0 }
 0x127   : > { %v607_v23 = vpop.f32.mrb[0].mxu1 }
 0x128   : > { %v608_v25 = vadd.f32 %v607_v23, %v415_v20  ;;  %v609_v26 = vpop.f32.mrb[1].mxu1  ;;  %v1911_v42 = vpop.f32.mrb[16].mxu0 }
 0x129   : > { %v610_v28 = vadd.f32 %v609_v26, %v415_v20  ;;  %v1913_v45 = vpop.f32.mrb[17].mxu0  ;;  %v445_v20 = vpop.permute.xlu0 %444 }
 0x12a   : > { %v769_v30 = vadd.f32 %v768_v10, %v608_v25 }
 0x12b   : > { %v771_v32 = vadd.f32 %v770_v11, %v610_v28  ;;  %v613_v33 = vpop.f32.mrb[2].mxu1 }
 0x12c   : > { %v614_v35 = vadd.f32 %v613_v33, %v420_v29  ;;  %v615_v36 = vpop.f32.mrb[3].mxu1  ;;  %v1207_v47 = vmul.f32 -1.442695, %v769_v30  ;;  %v1915_v52 = vpop.f32.mrb[18].mxu0 }
 0x12d   : > { %v616_v38 = vadd.f32 %v615_v36, %v420_v29  ;;  %v1917_v55 = vpop.f32.mrb[19].mxu0  ;;  %v1208_v56 = vmul.f32 -1.442695, %v771_v32  ;;  %v450_v36 = vpop.permute.xlu1 %449 }
 0x12e   : > { %v775_v39 = vadd.f32 %v774_v12, %v614_v35  ;;  %1401 = vpow2.f32 %v1207_v47 }
 0x12f   : > { %v777_v40 = vadd.f32 %v776_v13, %v616_v38  ;;  %v619_v41 = vpop.f32.mrb[4].mxu1  ;;  %1403 = vpow2.f32 %v1208_v56 }
 0x130   : > { %v620_v43 = vadd.f32 %v619_v41, %v425_v31  ;;  %v621_v44 = vpop.f32.mrb[5].mxu1  ;;  %v1209_v60 = vmul.f32 -1.442695, %v775_v39  ;;  %v1919_v63 = vpop.f32.mrb[20].mxu0 }
 0x131   : > { %v622_v46 = vadd.f32 %v621_v44, %v425_v31  ;;  %v1210_v1 = vmul.f32 -1.442695, %v777_v40  ;;  %v1921_v3 = vpop.f32.mrb[21].mxu0 }
 0x132   : > { %v781_v49 = vadd.f32 %v780_v14, %v620_v43  ;;  %1405 = vpow2.f32 %v1209_v60 }
 0x133   : > { %v783_v50 = vadd.f32 %v782_v15, %v622_v46  ;;  %v625_v51 = vpop.f32.mrb[6].mxu1  ;;  %1407 = vpow2.f32 %v1210_v1 }
 0x134   : > { %v626_v53 = vadd.f32 %v625_v51, %v430_v48  ;;  %v627_v54 = vpop.f32.mrb[7].mxu1  ;;  %v1211_v4 = vmul.f32 -1.442695, %v781_v49  ;;  %v1923_v12 = vpop.f32.mrb[22].mxu0 }
 0x135   : > { %v628_v57 = vadd.f32 %v627_v54, %v430_v48  ;;  %v1212_v6 = vmul.f32 -1.442695, %v783_v50 }
 0x136   : > { %v787_v59 = vadd.f32 %v786_v16, %v626_v53  ;;  %v1925_v16 = vpop.f32.mrb[23].mxu0  ;;  %1409 = vpow2.f32 %v1211_v4 }
 0x137   : > { %v789_v61 = vadd.f32 %v788_v17, %v628_v57  ;;  %v631_v62 = vpop.f32.mrb[8].mxu1  ;;  %1411 = vpow2.f32 %v1212_v6 }
 0x138   : > { %v632_v0 = vadd.f32 %v631_v62, %v435_v58  ;;  %v633_v2 = vpop.f32.mrb[9].mxu1  ;;  %v1213_v9 = vmul.f32 -1.442695, %v787_v59  ;;  %v1929_v26 = vpop.f32.mrb[24].mxu0 }
 0x139   : > { %v634_v5 = vadd.f32 %v633_v2, %v435_v58  ;;  %v1214_v13 = vmul.f32 -1.442695, %v789_v61  ;;  %v1402_v28 = vpop.eup %1401  ;;  %v1931_v32 = vpop.f32.mrb[25].mxu0 }
 0x13a   : > { %v793_v8 = vadd.f32 %v792_v18, %v632_v0  ;;  %1413 = vpow2.f32 %v1213_v9  ;;  %v935_v39 = vadd.f32 1.0, %v1402_v28 }
 0x13b   : > { %v795_v10 = vadd.f32 %v794_v19, %v634_v5  ;;  %v637_v11 = vpop.f32.mrb[10].mxu1  ;;  %1415 = vpow2.f32 %v1214_v13 }
 0x13c   : > { %v638_v14 = vadd.f32 %v637_v11, %v440_v7  ;;  %v639_v15 = vpop.f32.mrb[11].mxu1  ;;  %v1215_v23 = vmul.f32 -1.442695, %v793_v8  ;;  %v1935_v41 = vpop.f32.mrb[26].mxu0 }
 0x13d   : > { %v640_v17 = vadd.f32 %v639_v15, %v440_v7  ;;  %v1216_v29 = vmul.f32 -1.442695, %v795_v10  ;;  %v1937_v47 = vpop.f32.mrb[27].mxu0  ;;  %v460_v7 = vpop.permute.xlu1 %459 }
 0x13e   : > { %v799_v25 = vadd.f32 %v1899_v21, %v638_v14  ;;  %1417 = vpow2.f32 %v1215_v23  ;;  %v1404_v21 = vpop.eup %1403 }
 0x13f   : > { %v801_v18 = vadd.f32 %v1901_v22, %v640_v17  ;;  %v643_v19 = vpop.f32.mrb[12].mxu1  ;;  %1419 = vpow2.f32 %v1216_v29  ;;  %v1406_v48 = vpop.eup %1405  ;;  %v936_v53 = vadd.f32 1.0, %v1404_v21 }
 0x140   : > { %v644_v30 = vadd.f32 %v643_v19, %v445_v20  ;;  %v645_v31 = vpop.f32.mrb[13].mxu1  ;;  %v1217_v33 = vmul.f32 -1.442695, %v799_v25  ;;  %v1408_v51 = vpop.eup %1407  ;;  %v937_v61 = vadd.f32 1.0, %v1406_v48 }
 0x141   : > { %v646_v35 = vadd.f32 %v645_v31, %v445_v20  ;;  %v1218_v43 = vmul.f32 -1.442695, %v801_v18  ;;  %v1410_v56 = vpop.eup %1409  ;;  %v1941_v59 = vpop.f32.mrb[28].mxu0  ;;  %v938_v4 = vadd.f32 1.0, %v1408_v51 }
 0x142   : > { %v805_v38 = vadd.f32 %v1903_v24, %v644_v30  ;;  %1421 = vpow2.f32 %v1217_v33  ;;  %v455_v24 = vpop.permute.xlu0 %454  ;;  %v1412_v60 = vpop.eup %1411  ;;  %v939_v6 = vadd.f32 1.0, %v1410_v56 }
 0x143   : > { %v807_v22 = vadd.f32 %v1905_v27, %v646_v35  ;;  %v649_v40 = vpop.f32.mrb[14].mxu1  ;;  %1423 = vrcp.f32 %v935_v39  ;;  %v1943_v0 = vpop.f32.mrb[29].mxu0  ;;  %v940_v8 = vadd.f32 1.0, %v1412_v60 }
 0x144   : > { %v650_v44 = vadd.f32 %v649_v40, %v450_v36  ;;  %v651_v46 = vpop.f32.mrb[15].mxu1  ;;  %v1219_v49 = vmul.f32 -1.442695, %v805_v38  ;;  %1425 = vpow2.f32 %v1218_v43  ;;  %v1414_v2 = vpop.eup %1413 }
 0x145   : > { %v652_v50 = vadd.f32 %v651_v46, %v450_v36  ;;  %v1220_v27 = vmul.f32 -1.442695, %v807_v22  ;;  %v1947_v11 = vpop.f32.mrb[30].mxu0  ;;  %v941_v14 = vadd.f32 1.0, %v1414_v2 }
 0x146   : > { %v811_v54 = vadd.f32 %v1907_v34, %v650_v44  ;;  %1427 = vpow2.f32 %v1219_v49  ;;  %v1416_v34 = vpop.eup %1415  ;;  %v1949_v20 = vpop.f32.mrb[31].mxu0 }
 0x147   : > { %v813_v57 = vadd.f32 %v1909_v37, %v652_v50  ;;  %v655_v58 = vpop.f32.mrb[16].mxu1  ;;  %1429 = vrcp.f32 %v936_v53  ;;  %v942_v23 = vadd.f32 1.0, %v1416_v34  ;;  %v465_v29 = vpop.permute.xlu0 %464 }
 0x148   : > { %v656_v62 = vadd.f32 %v655_v58, %v455_v24  ;;  %v657_v1 = vpop.f32.mrb[17].mxu1  ;;  %1431 = vpow2.f32 %v1220_v27  ;;  %v1418_v13 = vpop.eup %1417 }
 0x149   : > { %v658_v5 = vadd.f32 %v657_v1, %v455_v24  ;;  %1433 = vrcp.f32 %v937_v61  ;;  %v1420_v18 = vpop.eup %1419  ;;  %v1222_v33 = vmul.f32 -1.442695, %v813_v57  ;;  %v470_v44 = vpop.permute.xlu1 %469 }
 0x14a   : > { %v817_v37 = vadd.f32 %v1911_v42, %v656_v62  ;;  %1435 = vrcp.f32 %v938_v4  ;;  %v1221_v42 = vmul.f32 -1.442695, %v811_v54  ;;  %v944_v21 = vadd.f32 1.0, %v1420_v18 }
 0x14b   : > { %v819_v9 = vadd.f32 %v1913_v45, %v658_v5  ;;  %v661_v10 = vpop.f32.mrb[18].mxu1  ;;  %1437 = vrcp.f32 %v939_v6  ;;  %v943_v45 = vadd.f32 1.0, %v1418_v13 }
 0x14c   : > { %v662_v15 = vadd.f32 %v661_v10, %v460_v7  ;;  %v663_v17 = vpop.f32.mrb[19].mxu1  ;;  %v1422_v28 = vpop.eup %1421  ;;  %1439 = vrcp.f32 %v940_v8  ;;  %v1223_v46 = vmul.f32 -1.442695, %v817_v37 }
 0x14d   : > { %v664_v25 = vadd.f32 %v663_v17, %v460_v7  ;;  %1441 = vrcp.f32 %v941_v14  ;;  %v1953_v38 = vpop.eup %1423  ;;  %v945_v40 = vadd.f32 1.0, %v1422_v28  ;;  %v1224_v50 = vmul.f32 -1.442695, %v819_v9 }
 0x14e   : > { %v823_v19 = vadd.f32 %v1915_v52, %v662_v15  ;;  %1443 = vrcp.f32 %v942_v23  ;;  %v1426_v22 = vpop.eup %1425 }
 0x14f   : > { %v825_v30 = vadd.f32 %v1917_v55, %v664_v25  ;;  %v667_v31 = vpop.f32.mrb[20].mxu1  ;;  %1445 = vpow2.f32 %v1221_v42  ;;  %v946_v54 = vadd.f32 1.0, %v1426_v22 }
 0x150   : > { %v668_v35 = vadd.f32 %v667_v31, %v465_v29  ;;  %v669_v36 = vpop.f32.mrb[21].mxu1  ;;  %v1428_v43 = vpop.eup %1427  ;;  %1447 = vrcp.f32 %v943_v45  ;;  %v1225_v60 = vmul.f32 -1.442695, %v823_v19 }
 0x151   : > { %v670_v39 = vadd.f32 %v669_v36, %v465_v29  ;;  %v1957_v49 = vpop.eup %1429  ;;  %1449 = vpow2.f32 %v1222_v33  ;;  %v1226_v6 = vmul.f32 -1.442695, %v825_v30 }
 0x152   : > { %v829_v52 = vadd.f32 %v1919_v63, %v668_v35  ;;  %v1432_v24 = vpop.eup %1431  ;;  %1451 = vrcp.f32 %v944_v21  ;;  %v947_v63 = vadd.f32 1.0, %v1428_v43 }
 0x153   : > { %v831_v55 = vadd.f32 %v1921_v3, %v670_v39  ;;  %v673_v48 = vpop.f32.mrb[22].mxu1  ;;  %v1959_v27 = vpop.eup %1433  ;;  %1453 = vrcp.f32 %v945_v40  ;;  %v948_v2 = vadd.f32 1.0, %v1432_v24 }
 0x154   : > { %v674_v51 = vadd.f32 %v673_v48, %v470_v44  ;;  %v675_v53 = vpop.f32.mrb[23].mxu1  ;;  %v1962_v58 = vpop.eup %1435  ;;  %1455 = vpow2.f32 %v1223_v46  ;;  %v1227_v37 = vmul.f32 -1.442695, %v829_v52 }
 0x155   : > { %v676_v56 = vadd.f32 %v675_v53, %v470_v44  ;;  %v475_v3 = vpop.permute.xlu0 %474  ;;  %v1965_v1 = vpop.eup %1437  ;;  %1457 = vpow2.f32 %v1224_v50  ;;  %v1228_v25 = vmul.f32 -1.442695, %v831_v55 }
 0x156   : > { %v835_v57 = vadd.f32 %v1923_v12, %v674_v51  ;;  %v1967_v34 = vpop.eup %1439  ;;  %1459 = vrcp.f32 %v946_v54  ;;  %v1015_v54 = vld [vmem:[%s1986_s19] sm:$0xff] }
 0x157   : > { %v837_v61 = vadd.f32 %v1925_v16, %v676_v56  ;;  %v679_v62 = vpop.f32.mrb[24].mxu1  ;;  %v1969_v12 = vpop.eup %1441  ;;  %1461 = vrcp.f32 %v947_v63 }
 0x158   : > { %v680_v4 = vadd.f32 %v679_v62, %v475_v3  ;;  %v681_v5 = vpop.f32.mrb[25].mxu1  ;;  %v1972_v9 = vpop.eup %1443  ;;  %1463 = vpow2.f32 %v1225_v60  ;;  %v1229_v31 = vmul.f32 -1.442695, %v835_v57  ;;  %v1016_v57 = vld [vmem:[%s1986_s19 + $0x8] sm:$0xff] }
 0x159   : > { %v682_v7 = vadd.f32 %v681_v5, %v475_v3  ;;  %v480_v16 = vpop.permute.xlu1 %479  ;;  %v1446_v14 = vpop.eup %1445  ;;  %1465 = vrcp.f32 %v948_v2  ;;  %v1230_v21 = vmul.f32 -1.442695, %v837_v61  ;;  %v1017_v2 = vld [vmem:[%s1986_s19 + $0x10] sm:$0xff] }
 0x15a   : > { %v841_v8 = vadd.f32 %v1929_v26, %v680_v4  ;;  %v1448_v23 = vpop.eup %1447  ;;  %1467 = vpow2.f32 %v1226_v6  ;;  %v949_v28 = vadd.f32 1.0, %v1446_v14  ;;  %v485_v45 = vpop.permute.xlu0 %484  ;;  %v1018_v14 = vld [vmem:[%s1986_s19 + $0x18] sm:$0xff] }
 0x15b   : > { %v843_v10 = vadd.f32 %v1931_v32, %v682_v7  ;;  %v685_v13 = vpop.f32.mrb[26].mxu1  ;;  %v1450_v42 = vpop.eup %1449  ;;  %1469 = vpow2.f32 %v1227_v37  ;;  %v1023_v62 = vmul.f32 %v1448_v23, %v1015_v54 }
 0x15c   : > { %v686_v15 = vadd.f32 %v685_v13, %v480_v16  ;;  %v687_v17 = vpop.f32.mrb[27].mxu1  ;;  %v1452_v19 = vpop.eup %1451  ;;  %1471 = vtanh.f32 %v841_v8  ;;  %v950_v46 = vadd.f32 1.0, %v1450_v42 }
 0x15d   : > { %v688_v18 = vadd.f32 %v687_v17, %v480_v16  ;;  %v1454_v30 = vpop.eup %1453  ;;  %1473 = vtanh.f32 %v843_v10  ;;  %v1024_v5 = vmul.f32 %v1452_v19, %v1016_v57  ;;  %v1019_v17 = vld [vmem:[%s1986_s19 + $0x20] sm:$0xff] }
 0x15e   : > { %v847_v26 = vadd.f32 %v1935_v41, %v686_v15  ;;  %v1456_v36 = vpop.eup %1455  ;;  %1475 = vpow2.f32 %v1228_v25  ;;  %v1025_v8 = vmul.f32 %v1454_v30, %v1017_v2 }
 0x15f   : > { %v849_v32 = vadd.f32 %v1937_v47, %v688_v18  ;;  %v691_v29 = vpop.f32.mrb[28].mxu1  ;;  %v1458_v41 = vpop.eup %1457 }
 0x160   : > { %v692_v33 = vadd.f32 %v691_v29, %v485_v45  ;;  %v693_v35 = vpop.f32.mrb[29].mxu1  ;;  %1477 = vtanh.f32 %v847_v26  ;;  %v1460_v40 = vpop.eup %1459  ;;  %v952_v60 = vadd.f32 1.0, %v1458_v41 }
 0x161   : > { %v694_v39 = vadd.f32 %v693_v35, %v485_v45  ;;  %1479 = vrcp.f32 %v949_v28  ;;  %v490_v47 = vpop.permute.xlu1 %489  ;;  %v1462_v44 = vpop.eup %1461 }
 0x162   : > { %v853_v22 = vadd.f32 %v1941_v59, %v692_v33  ;;  %1481 = vpow2.f32 %v1229_v31  ;;  %v1464_v50 = vpop.eup %1463  ;;  %v951_v59 = vadd.f32 1.0, %v1456_v36  ;;  %v1027_v45 = vmul.f32 %v1462_v44, %v1019_v17  ;;  %v1021_v31 = vld [vmem:[%s1986_s19 + $0x30] sm:$0xff] }
 0x163   : > { %v855_v52 = vadd.f32 %v1943_v0, %v694_v39  ;;  %v697_v43 = vpop.f32.mrb[30].mxu1  ;;  %1483 = vpow2.f32 %v1230_v21  ;;  %v1988_v53 = vpop.eup %1465  ;;  %v953_v7 = vadd.f32 1.0, %v1464_v50  ;;  %v1022_v21 = vld [vmem:[%s1986_s19 + $0x38] sm:$0xff] }
 0x164   : > { %v698_v55 = vadd.f32 %v697_v43, %v490_v47  ;;  %v699_v48 = vpop.f32.mrb[31].mxu1  ;;  %1485 = vtanh.f32 %v849_v32  ;;  %v1468_v24 = vpop.eup %1467  ;;  %v1020_v32 = vld [vmem:[%s1986_s19 + $0x28] sm:$0xff] }
 0x165   : > { %v700_v51 = vadd.f32 %v699_v48, %v490_v47  ;;  %1487 = vtanh.f32 %v853_v22  ;;  %v1470_v63 = vpop.eup %1469  ;;  %v954_v15 = vadd.f32 1.0, %v1468_v24 }
 0x166   : > { %v859_v0 = vadd.f32 %v1947_v11, %v698_v55  ;;  %1489 = vrcp.f32 %v950_v46  ;;  %v1472_v3 = vpop.eup %1471  ;;  %v955_v23 = vadd.f32 1.0, %v1470_v63 }
 0x167   : > { %v861_v56 = vadd.f32 %v1949_v20, %v700_v51  ;;  %1491 = vrcp.f32 %v951_v59  ;;  %v1474_v61 = vpop.eup %1473  ;;  %v1031_v4 = vmul.f32 %v1472_v3, %v1953_v38 }
 0x168   : > { %1493 = vtanh.f32 %v855_v52  ;;  %v1476_v11 = vpop.eup %1475  ;;  %v1032_v20 = vmul.f32 %v1474_v61, %v1957_v49 }
 0x169   : > { %1495 = vtanh.f32 %v859_v0  ;;  %v1039_v37 = vadd.f32 %v1031_v4, %v1023_v62  ;;  %v956_v42 = vadd.f32 1.0, %v1476_v11 }
 0x16a   : > { %v1478_v6 = vpop.eup %1477  ;;  %1497 = vtanh.f32 %v861_v56  ;;  %v1040_v16 = vadd.f32 %v1032_v20, %v1024_v5 }
 0x16b   : > { %v1480_v38 = vpop.eup %1479  ;;  %1499 = vrcp.f32 %v952_v60  ;;  %v1033_v10 = vmul.f32 %v1478_v6, %v1959_v27  ;;  %1071 = vst [vmem:[%s2000_s17] sm:$0xff] %v1039_v37  ;;  %v1026_v27 = vmul.f32 %v1460_v40, %v1018_v14 }
 0x16c   : > { %v1482_v13 = vpop.eup %1481  ;;  %1501 = vtanh.f32 %v1039_v37  ;;  %1072 = vst [vmem:[%s2000_s17 + $0x8] sm:$0xff] %v1040_v16  ;;  %v1029_v47 = vmul.f32 %v1480_v38, %v1021_v31 }
 0x16d   : > { %v1484_v49 = vpop.eup %1483  ;;  %1503 = vtanh.f32 %v1040_v16  ;;  %v1041_v25 = vadd.f32 %v1033_v10, %v1025_v8  ;;  %v957_v33 = vadd.f32 1.0, %v1482_v13 }
 0x16e   : > { %v1486_v18 = vpop.eup %1485  ;;  %1505 = vrcp.f32 %v953_v7  ;;  %v958_v39 = vadd.f32 1.0, %v1484_v49 }
 0x16f   : > { %v1488_v26 = vpop.eup %1487  ;;  %1507 = vtanh.f32 %v1041_v25  ;;  %1073 = vst [vmem:[%s2000_s17 + $0x10] sm:$0xff] %v1041_v25  ;;  %v1034_v19 = vmul.f32 %v1486_v18, %v1962_v58  ;;  %v1028_v58 = vmul.f32 %v1988_v53, %v1020_v32 }
 0x170   : > { %v1490_v28 = vpop.eup %1489  ;;  %1509 = vrcp.f32 %v954_v15  ;;  %v1035_v29 = vmul.f32 %v1488_v26, %v1965_v1 }
 0x171   : > { %v1492_v30 = vpop.eup %1491  ;;  %1511 = vrcp.f32 %v955_v23  ;;  %v1042_v35 = vadd.f32 %v1034_v19, %v1026_v27  ;;  %v1030_v44 = vmul.f32 %v1490_v28, %v1022_v21 }
 0x172   : > { %v1494_v36 = vpop.eup %1493  ;;  %1513 = vrcp.f32 %v956_v42  ;;  %v1043_v41 = vadd.f32 %v1035_v29, %v1027_v45 }
 0x173   : > { %v1496_v22 = vpop.eup %1495  ;;  %1515 = vtanh.f32 %v1042_v35  ;;  %1074 = vst [vmem:[%s2000_s17 + $0x18] sm:$0xff] %v1042_v35  ;;  %v1036_v40 = vmul.f32 %v1494_v36, %v1967_v34 }
 0x174   : > { %v1498_v1 = vpop.eup %1497  ;;  %1517 = vtanh.f32 %v1043_v41  ;;  %1075 = vst [vmem:[%s2000_s17 + $0x20] sm:$0xff] %v1043_v41  ;;  %v1037_v52 = vmul.f32 %v1496_v22, %v1969_v12 }
 0x175   : > { %v1500_v43 = vpop.eup %1499  ;;  %1519 = vrcp.f32 %v957_v33  ;;  %v1044_v46 = vadd.f32 %v1036_v40, %v1028_v58  ;;  %v1038_v55 = vmul.f32 %v1498_v1, %v1972_v9 }
 0x176   : > { %v1502_v48 = vpop.eup %1501  ;;  %1521 = vrcp.f32 %v958_v39  ;;  %v1045_v34 = vadd.f32 %v1037_v52, %v1029_v47 }
 0x177   : > { %v1504_v50 = vpop.eup %1503  ;;  %v1055_v12 = vmul.f32 %v1502_v48, %v1492_v30  ;;  %1523 = vtanh.f32 %v1044_v46  ;;  %1076 = vst [vmem:[%s2000_s17 + $0x28] sm:$0xff] %v1044_v46  ;;  %v1046_v59 = vadd.f32 %v1038_v55, %v1030_v44 }
 0x178   : > { %v1506_v51 = vpop.eup %1505  ;;  %v1056_v53 = vmul.f32 %v1504_v50, %v1500_v43  ;;  %1525 = vtanh.f32 %v1045_v34  ;;  %1077 = vst [vmem:[%s2000_s17 + $0x30] sm:$0xff] %v1045_v34 }
 0x179   : > { %v1508_v9 = vpop.eup %1507  ;;  %1063 = vst [vmem:[%s2024_s22] sm:$0xff] %v1055_v12  ;;  %1527 = vtanh.f32 %v1046_v59  ;;  %1078 = vst [vmem:[%s2000_s17 + $0x38] sm:$0xff] %v1046_v59 }
 0x17a   : > { %v1510_v0 = vpop.eup %1509  ;;  %1064 = vst [vmem:[%s2024_s22 + $0x8] sm:$0xff] %v1056_v53  ;;  %v1057_v24 = vmul.f32 %v1508_v9, %v1506_v51 }
 0x17b   : > { %v1512_v54 = vpop.eup %1511 }
 0x17c   : > { %v1514_v56 = vpop.eup %1513  ;;  %1065 = vst [vmem:[%s2024_s22 + $0x10] sm:$0xff] %v1057_v24 }
 0x17d   : > { %v1516_v63 = vpop.eup %1515 }
 0x17e   : > { %v1518_v57 = vpop.eup %1517  ;;  %v1058_v3 = vmul.f32 %v1516_v63, %v1510_v0 }
 0x17f   : > { %v1520_v60 = vpop.eup %1519  ;;  %v1059_v61 = vmul.f32 %v1518_v57, %v1512_v54 }
 0x180   : > { %v1522_v62 = vpop.eup %1521  ;;  %1066 = vst [vmem:[%s2024_s22 + $0x18] sm:$0xff] %v1058_v3 }
 0x181   : > { %v1524_v2 = vpop.eup %1523  ;;  %1067 = vst [vmem:[%s2024_s22 + $0x20] sm:$0xff] %v1059_v61 }
 0x182   : > { %v1526_v4 = vpop.eup %1525  ;;  %v1060_v11 = vmul.f32 %v1524_v2, %v1514_v56 }
 0x183   : > { %v1528_v5 = vpop.eup %1527  ;;  %v1061_v20 = vmul.f32 %v1526_v4, %v1520_v60 }
 0x184   : > { %1068 = vst [vmem:[%s2024_s22 + $0x28] sm:$0xff] %v1060_v11  ;;  %v1062_v6 = vmul.f32 %v1528_v5, %v1522_v62 }
 0x185   : > { %1069 = vst [vmem:[%s2024_s22 + $0x30] sm:$0xff] %v1061_v20 }
 0x186   : > { %1070 = vst [vmem:[%s2024_s22 + $0x38] sm:$0xff] %v1062_v6 }
 0x187 PF: > { %s16_s18 = sadd.s32 1, %s1535_s18  }
 0x188   : > { %p13_p4 = scmp.ge.s32.totalorder %s16_s18, 4  }
 0x18a   :  { %15 = sbr.rel (!%p13_p4) target bundleno = 1 (0x1), region = 81 }

</bundles_post_ra>
